<compile_context>
chip_gen: v7x
topology: tpu7x:2x2x1
jax: 0.10.0
libtpu: 0.0.40
codegen_flags: <defaults>
</compile_context>

<pallas_src>
import functools

import jax
import jax.numpy as jnp
from jax.experimental import pallas as pl
from jax.experimental.pallas import tpu as pltpu


LN_EPS = 1e-5  # PyTorch nn.LayerNorm default


def _round_up(x, m):
    return ((x + m - 1) // m) * m


# ----------------------------------------------------------------------------
# Kernel
# ----------------------------------------------------------------------------
def _critic_kernel(x_ref, wt_ref, bias_ref, wha_ref, whb_ref, out_ref,
                   *, hidden, out_dim):
    f32 = jnp.float32
    cdt = wha_ref.dtype  # MXU input dtype (e.g. bfloat16); accumulation is f32

    # Consolidated constant slab: row0=bt, row1=gamma, row2=beta,
    # row3=[b1a|b2a], row4=[b1b|b2b|0-pad].
    bt = bias_ref[0:1, 0:hidden]
    gamma = bias_ref[1:2, 0:hidden]
    beta = bias_ref[2:3, 0:hidden]
    bha = bias_ref[3:4, 0:2 * hidden]
    bhb = bias_ref[4:5, 0:out_dim]

    # --- trunk: single Linear -> LayerNorm -> Tanh ---------------------------
    # x is the pre-concatenated [obs|z|action] tile, K-padded with zeros to match
    # the zero-padded rows of wt, so one dot is exact.
    h = jnp.dot(x_ref[...], wt_ref[...], preferred_element_type=f32) + bt

    # One-pass (biased) variance: the two reductions are independent.
    mean = jnp.mean(h, axis=-1, keepdims=True)
    mean_sq = jnp.mean(h * h, axis=-1, keepdims=True)
    var = jnp.maximum(mean_sq - mean * mean, 0.0)
    h = (h - mean) * jax.lax.rsqrt(var + LN_EPS)
    h = jnp.tanh(h * gamma + beta)

    # --- fused F1/F2 heads ----------------------------------------------------
    # Layer 1 of both heads in one wide matmul: (tb, hidden) @ (hidden, 2*hidden).
    hb = h.astype(cdt)
    a = jnp.dot(hb, wha_ref[...], preferred_element_type=f32) + bha
    a = jnp.maximum(a, 0.0).astype(cdt)

    # Layer 2 of both heads via a block-diagonal (2*hidden, out_dim) weight; the
    # result slab holds [F1 | F2 | zero-pad] and is lane-dense (out_dim % 128 == 0).
    out = jnp.dot(a, whb_ref[...], preferred_element_type=f32) + bhb
    out_ref[...] = out.astype(out_ref.dtype)


# ----------------------------------------------------------------------------
# Parameters
# ----------------------------------------------------------------------------
def init_critic_params(key, obs_dim, z_dim, action_dim, hidden_dim,
                       dtype=jnp.float32):
    """Deterministic synthetic parameters (shapes match the PyTorch module,
    Linear weights stored transposed as (in_features, out_features))."""
    in_dim = obs_dim + z_dim + action_dim
    ks = jax.random.split(key, 6)

    def lin(k, fan_in, fan_out):
        w = jax.random.normal(k, (fan_in, fan_out), dtype) * (1.0 / jnp.sqrt(fan_in))
        b = jnp.zeros((1, fan_out), dtype)
        return w, b

    wt, bt = lin(ks[0], in_dim, hidden_dim)                 # trunk Linear
    gamma = jnp.ones((1, hidden_dim), dtype)                # LayerNorm weight
    beta = jnp.zeros((1, hidden_dim), dtype)                # LayerNorm bias
    w1a, b1a = lin(ks[1], hidden_dim, hidden_dim)           # F1 Linear 1
    w1b, b1b = lin(ks[2], hidden_dim, z_dim)                # F1 Linear 2
    w2a, b2a = lin(ks[3], hidden_dim, hidden_dim)           # F2 Linear 1
    w2b, b2b = lin(ks[4], hidden_dim, z_dim)                # F2 Linear 2
    return dict(wt=wt, bt=bt, gamma=gamma, beta=beta,
                w1a=w1a, b1a=b1a, w1b=w1b, b1b=b1b,
                w2a=w2a, b2a=b2a, w2b=w2b, b2b=b2b)


def pack_critic_params(params, obs_dim, z_dim, action_dim,
                       compute_dtype=jnp.bfloat16):
    """One-time repack of raw params into the fused / lane-dense kernel layout."""
    cd = jnp.dtype(compute_dtype)
    f32 = jnp.float32
    wt = params["wt"]
    in_dim, hidden = wt.shape
    assert in_dim == obs_dim + z_dim + action_dim

    # Single trunk weight, K-padded to the dtype's sublane tile (8 f32 / 16 bf16).
    granule = max(8, 32 // cd.itemsize)
    k_pad = _round_up(in_dim, granule)
    wt_p = jnp.zeros((k_pad, hidden), cd)
    wt_p = wt_p.at[:in_dim, :].set(wt.astype(cd))

    # Fuse the two head first-layers: (hidden, 2*hidden).
    wha = jnp.concatenate([params["w1a"], params["w2a"]], axis=1).astype(cd)

    # Fuse the two head second-layers block-diagonally into a lane-dense slab.
    out_dim = max(128, _round_up(2 * z_dim, 128))
    whb = jnp.zeros((2 * hidden, out_dim), cd)
    whb = whb.at[:hidden, :z_dim].set(params["w1b"].astype(cd))
    whb = whb.at[hidden:, z_dim:2 * z_dim].set(params["w2b"].astype(cd))

    # All small f32 constants in one (8, W) slab (1 DMA / 1 buffer).
    w_slab = _round_up(max(2 * hidden, out_dim), 128)
    bias = jnp.zeros((8, w_slab), f32)
    bias = bias.at[0, :hidden].set(params["bt"][0].astype(f32))
    bias = bias.at[1, :hidden].set(params["gamma"][0].astype(f32))
    bias = bias.at[2, :hidden].set(params["beta"][0].astype(f32))
    bias = bias.at[3, :hidden].set(params["b1a"][0].astype(f32))
    bias = bias.at[3, hidden:2 * hidden].set(params["b2a"][0].astype(f32))
    bias = bias.at[4, :z_dim].set(params["b1b"][0].astype(f32))
    bias = bias.at[4, z_dim:2 * z_dim].set(params["b2b"][0].astype(f32))

    return dict(wt=wt_p, wha=wha, whb=whb, bias=bias)


# ----------------------------------------------------------------------------
# Wrapper
# ----------------------------------------------------------------------------
def _choose_tiling(B, batch_tile=256):
    """Pick a batch tile (multiple of 16) that (a) keeps padding small (< one
    tile) and (b) yields an even number of grid steps whenever the batch splits,
    so v7x's two TensorCores get balanced work."""
    gran = 16
    if B <= gran:
        return gran, gran
    n = -(-B // batch_tile)          # ceil(B / batch_tile)
    if n == 1:
        n = 2                        # batch is splittable: give both TCs a tile
    elif n % 2 == 1:
        n += 1                       # even step count for 2 TensorCores
    tb = _round_up(-(-B // n), gran)
    Bp = _round_up(B, tb)
    return tb, Bp


def _const_spec(arr):
    """Grid-invariant operand: constant index_map + single buffer (it is never
    re-DMA'd, so double-buffering would only waste VMEM)."""
    try:
        return pl.BlockSpec(arr.shape, lambda i: (0, 0),
                            pipeline_mode=pl.Buffered(1))
    except (TypeError, ValueError):
        return pl.BlockSpec(arr.shape, lambda i: (0, 0))


@functools.partial(jax.jit, static_argnames=("batch_tile",))
def critic_forward(obs, z, action, packed, batch_tile=256):
    """Pallas Critic forward. obs/z/action: (B, *) float arrays, packed params
    from pack_critic_params. Returns (F1, F2) as float32 (B, z_dim) arrays."""
    B = obs.shape[0]
    z_dim = z.shape[-1]
    in_dim = obs.shape[-1] + z_dim + action.shape[-1]

    wt, wha, whb, bias = packed["wt"], packed["wha"], packed["whb"], packed["bias"]
    cd = wt.dtype
    k_pad, hidden = wt.shape
    out_dim = whb.shape[1]

    tb, Bp = _choose_tiling(B, batch_tile)

    # One XLA fusion: cast + concat + pad into the kernel's (Bp, k_pad) layout.
    # Zero K-padding matches the zero-padded wt rows, so the trunk dot is exact.
    x = jnp.concatenate([obs, z, action], axis=-1).astype(cd)
    x = jnp.pad(x, ((0, Bp - B), (0, k_pad - in_dim)))

    # VMEM budget: single-buffered weights + double-buffered I/O tiles +
    # per-tile intermediates, with 1.5x headroom, clamped to v7x's 64 MiB.
    cd_size = jnp.dtype(cd).itemsize
    weight_bytes = (wt.size + wha.size + whb.size) * cd_size + bias.size * 4
    io_bytes = 2 * tb * k_pad * cd_size + 2 * tb * out_dim * 4
    act_bytes = (tb * hidden * (4 + cd_size)
                 + tb * 2 * hidden * (4 + cd_size)
                 + tb * out_dim * 4)
    vmem_limit = int(1.5 * (weight_bytes + io_bytes + act_bytes)) + (2 << 20)
    vmem_limit = min(max(vmem_limit, 16 << 20), 64 << 20)

    kernel = functools.partial(_critic_kernel, hidden=hidden, out_dim=out_dim)

    out = pl.pallas_call(
        kernel,
        out_shape=jax.ShapeDtypeStruct((Bp, out_dim), jnp.float32),
        grid_spec=pltpu.PrefetchScalarGridSpec(
            num_scalar_prefetch=0,
            grid=(Bp // tb,),
            in_specs=[
                pl.BlockSpec((tb, k_pad), lambda i: (i, 0)),   # fused input tile
                _const_spec(wt),
                _const_spec(bias),
                _const_spec(wha),
                _const_spec(whb),
            ],
            out_specs=pl.BlockSpec((tb, out_dim), lambda i: (i, 0)),
        ),
        compiler_params=pltpu.CompilerParams(
            dimension_semantics=("parallel",),
            vmem_limit_bytes=vmem_limit,
        ),
    )(x, wt, bias, wha, whb)

    f1 = out[:B, :z_dim]
    f2 = out[:B, z_dim:2 * z_dim]
    return f1, f2


# ----------------------------------------------------------------------------
# Pure-JAX reference (mirrors the kernel's cast points for bf16 comparison)
# ----------------------------------------------------------------------------
def _reference_forward(obs, z, action, p, compute_dtype=jnp.float32):
    cast = lambda a: a.astype(compute_dtype).astype(jnp.float32)
    x = jnp.concatenate([cast(obs), cast(z), cast(action)], axis=-1)
    h = x @ cast(p["wt"]) + p["bt"]
    mean = jnp.mean(h, axis=-1, keepdims=True)
    var = jnp.mean(jnp.square(h - mean), axis=-1, keepdims=True)
    h = (h - mean) * jax.lax.rsqrt(var + LN_EPS)
    h = jnp.tanh(h * p["gamma"] + p["beta"])
    hc = cast(h)
    a1 = jnp.maximum(hc @ cast(p["w1a"]) + p["b1a"], 0.0)
    f1 = cast(a1) @ cast(p["w1b"]) + p["b1b"]
    a2 = jnp.maximum(hc @ cast(p["w2a"]) + p["b2a"], 0.0)
    f2 = cast(a2) @ cast(p["w2b"]) + p["b2b"]
    return f1, f2


if __name__ == "__main__":
    # Small shapes consistent with the module's forward.
    B, OBS_DIM, Z_DIM, ACT_DIM, HIDDEN = 2, 16, 8, 8, 32

    key = jax.random.PRNGKey(0)
    k_obs, k_z, k_act, k_par = jax.random.split(key, 4)
    obs = jax.random.normal(k_obs, (B, OBS_DIM), jnp.float32)
    zvec = jax.random.normal(k_z, (B, Z_DIM), jnp.float32)
    zvec = zvec / jnp.linalg.norm(zvec, axis=-1, keepdims=True)  # typical z
    action = jnp.tanh(jax.random.normal(k_act, (B, ACT_DIM), jnp.float32))

    params = init_critic_params(k_par, OBS_DIM, Z_DIM, ACT_DIM, HIDDEN)

    # --- production config: bf16 MXU inputs, f32 accumulation ---------------
    packed_bf16 = pack_critic_params(params, OBS_DIM, Z_DIM, ACT_DIM,
                                     compute_dtype=jnp.bfloat16)
    f1, f2 = critic_forward(obs, zvec, action, packed_bf16)
    jax.block_until_ready((f1, f2))
    r1, r2 = _reference_forward(obs, zvec, action, params, jnp.bfloat16)
    assert f1.shape == (B, Z_DIM) and f2.shape == (B, Z_DIM)
    assert jnp.allclose(f1, r1, atol=5e-3, rtol=5e-3)
    assert jnp.allclose(f2, r2, atol=5e-3, rtol=5e-3)

    # --- f32 config: tight numerical check against the f32 reference --------
    packed_f32 = pack_critic_params(params, OBS_DIM, Z_DIM, ACT_DIM,
                                    compute_dtype=jnp.float32)
    g1, g2 = critic_forward(obs, zvec, action, packed_f32)
    jax.block_until_ready((g1, g2))
    s1, s2 = _reference_forward(obs, zvec, action, params, jnp.float32)
    assert jnp.allclose(g1, s1, atol=1e-4, rtol=1e-4)
    assert jnp.allclose(g2, s2, atol=1e-4, rtol=1e-4)

    print("KERNEL_OK")
</pallas_src>

<mosaic_0001>
module attributes {stable_mosaic.version = 11 : i64} {
  func.func @_critic_kernel(%arg0: i32, %arg1: memref<16x32xbf16, #tpu.memory_space<vmem>>, %arg2: memref<32x32xbf16, #tpu.memory_space<vmem>>, %arg3: memref<8x128xf32, #tpu.memory_space<vmem>>, %arg4: memref<32x64xbf16, #tpu.memory_space<vmem>>, %arg5: memref<64x128xbf16, #tpu.memory_space<vmem>>, %arg6: memref<16x128xf32, #tpu.memory_space<vmem>>) attributes {dimension_semantics = [#tpu.dimension_semantics<parallel>], iteration_bounds = array<i64: 1>, scalar_prefetch = 0 : i64, scratch_operands = 0 : i64, tpu.core_type = #tpu.core_type<tc>, window_params = [{transform_indices = @transform_0, window_bounds = array<i64: 16, 32>}, {pipeline_mode = #tpu.pipeline_mode<synchronous>, transform_indices = @transform_1, window_bounds = array<i64: 32, 32>}, {pipeline_mode = #tpu.pipeline_mode<synchronous>, transform_indices = @transform_2, window_bounds = array<i64: 8, 128>}, {pipeline_mode = #tpu.pipeline_mode<synchronous>, transform_indices = @transform_3, window_bounds = array<i64: 32, 64>}, {pipeline_mode = #tpu.pipeline_mode<synchronous>, transform_indices = @transform_4, window_bounds = array<i64: 64, 128>}, {transform_indices = @transform_5, window_bounds = array<i64: 16, 128>}]} {
    %c0 = arith.constant 0 : index
    %c0_0 = arith.constant 0 : index
    %0 = vector.load %arg3[%c0, %c0_0] : memref<8x128xf32, #tpu.memory_space<vmem>>, vector<1x32xf32>
    %c1 = arith.constant 1 : index
    %c0_1 = arith.constant 0 : index
    %1 = vector.load %arg3[%c1, %c0_1] : memref<8x128xf32, #tpu.memory_space<vmem>>, vector<1x32xf32>
    %c2 = arith.constant 2 : index
    %c0_2 = arith.constant 0 : index
    %2 = vector.load %arg3[%c2, %c0_2] : memref<8x128xf32, #tpu.memory_space<vmem>>, vector<1x32xf32>
    %c3 = arith.constant 3 : index
    %c0_3 = arith.constant 0 : index
    %3 = vector.load %arg3[%c3, %c0_3] : memref<8x128xf32, #tpu.memory_space<vmem>>, vector<1x64xf32>
    %c4 = arith.constant 4 : index
    %c0_4 = arith.constant 0 : index
    %4 = vector.load %arg3[%c4, %c0_4] : memref<8x128xf32, #tpu.memory_space<vmem>>, vector<1x128xf32>
    %c0_5 = arith.constant 0 : index
    %c0_6 = arith.constant 0 : index
    %5 = vector.load %arg1[%c0_5, %c0_6] : memref<16x32xbf16, #tpu.memory_space<vmem>>, vector<16x32xbf16>
    %c0_7 = arith.constant 0 : index
    %c0_8 = arith.constant 0 : index
    %6 = vector.load %arg2[%c0_7, %c0_8] : memref<32x32xbf16, #tpu.memory_space<vmem>>, vector<32x32xbf16>
    %cst = arith.constant dense<0.000000e+00> : vector<16x32xf32>
    %7 = tpu.matmul %5, %6, %cst {dimension_numbers = #tpu.dot_dimension_numbers<[1], [0], [0], [1], [0, 0, 1, 1], [], []>} : vector<16x32xbf16>, vector<32x32xbf16>, vector<16x32xf32> -> vector<16x32xf32>
    %8 = vector.broadcast %0 : vector<1x32xf32> to vector<16x32xf32>
    %9 = arith.addf %7, %8 : vector<16x32xf32>
    %cst_9 = arith.constant dense<0.000000e+00> : vector<16xf32>
    %10 = vector.multi_reduction <add>, %9, %cst_9 [1] : vector<16x32xf32> to vector<16xf32>
    %11 = vector.shape_cast %10 : vector<16xf32> to vector<16x1xf32>
    %cst_10 = arith.constant 3.200000e+01 : f32
    %12 = vector.broadcast %cst_10 : f32 to vector<16x1xf32>
    %13 = arith.divf %11, %12 : vector<16x1xf32>
    %14 = arith.mulf %9, %9 : vector<16x32xf32>
    %cst_11 = arith.constant dense<0.000000e+00> : vector<16xf32>
    %15 = vector.multi_reduction <add>, %14, %cst_11 [1] : vector<16x32xf32> to vector<16xf32>
    %16 = vector.shape_cast %15 : vector<16xf32> to vector<16x1xf32>
    %cst_12 = arith.constant 3.200000e+01 : f32
    %17 = vector.broadcast %cst_12 : f32 to vector<16x1xf32>
    %18 = arith.divf %16, %17 : vector<16x1xf32>
    %19 = arith.mulf %13, %13 : vector<16x1xf32>
    %20 = arith.subf %18, %19 : vector<16x1xf32>
    %cst_13 = arith.constant 0.000000e+00 : f32
    %21 = vector.broadcast %cst_13 : f32 to vector<16x1xf32>
    %22 = arith.maximumf %20, %21 : vector<16x1xf32>
    %23 = vector.broadcast %13 : vector<16x1xf32> to vector<16x32xf32>
    %24 = arith.subf %9, %23 : vector<16x32xf32>
    %cst_14 = arith.constant 9.99999974E-6 : f32
    %25 = vector.broadcast %cst_14 : f32 to vector<16x1xf32>
    %26 = arith.addf %22, %25 : vector<16x1xf32>
    %27 = math.rsqrt %26 : vector<16x1xf32>
    %28 = vector.broadcast %27 : vector<16x1xf32> to vector<16x32xf32>
    %29 = arith.mulf %24, %28 : vector<16x32xf32>
    %30 = vector.broadcast %1 : vector<1x32xf32> to vector<16x32xf32>
    %31 = arith.mulf %29, %30 : vector<16x32xf32>
    %32 = vector.broadcast %2 : vector<1x32xf32> to vector<16x32xf32>
    %33 = arith.addf %31, %32 : vector<16x32xf32>
    %34 = math.tanh %33 : vector<16x32xf32>
    %35 = arith.truncf %34 : vector<16x32xf32> to vector<16x32xbf16>
    %c0_15 = arith.constant 0 : index
    %c0_16 = arith.constant 0 : index
    %36 = vector.load %arg4[%c0_15, %c0_16] : memref<32x64xbf16, #tpu.memory_space<vmem>>, vector<32x64xbf16>
    %cst_17 = arith.constant dense<0.000000e+00> : vector<16x64xf32>
    %37 = tpu.matmul %35, %36, %cst_17 {dimension_numbers = #tpu.dot_dimension_numbers<[1], [0], [0], [1], [0, 0, 1, 1], [], []>} : vector<16x32xbf16>, vector<32x64xbf16>, vector<16x64xf32> -> vector<16x64xf32>
    %38 = vector.broadcast %3 : vector<1x64xf32> to vector<16x64xf32>
    %39 = arith.addf %37, %38 : vector<16x64xf32>
    %cst_18 = arith.constant 0.000000e+00 : f32
    %40 = vector.broadcast %cst_18 : f32 to vector<16x64xf32>
    %41 = arith.maximumf %39, %40 : vector<16x64xf32>
    %42 = arith.truncf %41 : vector<16x64xf32> to vector<16x64xbf16>
    %c0_19 = arith.constant 0 : index
    %c0_20 = arith.constant 0 : index
    %43 = vector.load %arg5[%c0_19, %c0_20] : memref<64x128xbf16, #tpu.memory_space<vmem>>, vector<64x128xbf16>
    %cst_21 = arith.constant dense<0.000000e+00> : vector<16x128xf32>
    %44 = tpu.matmul %42, %43, %cst_21 {dimension_numbers = #tpu.dot_dimension_numbers<[1], [0], [0], [1], [0, 0, 1, 1], [], []>} : vector<16x64xbf16>, vector<64x128xbf16>, vector<16x128xf32> -> vector<16x128xf32>
    %45 = vector.broadcast %4 : vector<1x128xf32> to vector<16x128xf32>
    %46 = arith.addf %44, %45 : vector<16x128xf32>
    %c0_22 = arith.constant 0 : index
    %c0_23 = arith.constant 0 : index
    %47 = vector.load %arg6[%c0_22, %c0_23] : memref<16x128xf32, #tpu.memory_space<vmem>>, vector<16x128xf32>
    tpu.vector_store %arg6[%c0_22, %c0_23], %46 {strides = array<i32>} : memref<16x128xf32, #tpu.memory_space<vmem>>, vector<16x128xf32>,
    return
  }
  func.func @transform_0(%arg0: i32) -> (i32, i32) {
    %c0_i32 = arith.constant 0 : i32
    %c0_i32_0 = arith.constant 0 : i32
    return %arg0, %c0_i32 : i32, i32
  }
  func.func @transform_1(%arg0: i32) -> (i32, i32) {
    %c0_i32 = arith.constant 0 : i32
    %c0_i32_0 = arith.constant 0 : i32
    %c0_i32_1 = arith.constant 0 : i32
    return %c0_i32, %c0_i32_0 : i32, i32
  }
  func.func @transform_2(%arg0: i32) -> (i32, i32) {
    %c0_i32 = arith.constant 0 : i32
    %c0_i32_0 = arith.constant 0 : i32
    %c0_i32_1 = arith.constant 0 : i32
    return %c0_i32, %c0_i32_0 : i32, i32
  }
  func.func @transform_3(%arg0: i32) -> (i32, i32) {
    %c0_i32 = arith.constant 0 : i32
    %c0_i32_0 = arith.constant 0 : i32
    %c0_i32_1 = arith.constant 0 : i32
    return %c0_i32, %c0_i32_0 : i32, i32
  }
  func.func @transform_4(%arg0: i32) -> (i32, i32) {
    %c0_i32 = arith.constant 0 : i32
    %c0_i32_0 = arith.constant 0 : i32
    %c0_i32_1 = arith.constant 0 : i32
    return %c0_i32, %c0_i32_0 : i32, i32
  }
  func.func @transform_5(%arg0: i32) -> (i32, i32) {
    %c0_i32 = arith.constant 0 : i32
    %c0_i32_0 = arith.constant 0 : i32
    return %arg0, %c0_i32 : i32, i32
  }
}

</mosaic_0001>

<bundles_post_ra>
// kernel: critic_forward.1
= control target key start
LH: loop header
LB: loop body
LE: loop exit
PB: predicated region body
PF: predicated region fallthrough
CT: control target
= control target key end

     0   :  { %10 = vsyncpa [#allocation3], 0  ;;  %s570_s0 = inlined_call_operand.vmem [shape: bf16[16,32], index: 0, kind: input, shape index: {}]   ;;  %s571_s1 = inlined_call_operand.hbm [shape: bf16[32,32], index: 1, kind: input, shape index: {}]   ;;  %s572_s2 = inlined_call_operand.vmem [shape: f32[8,128], index: 2, kind: input, shape index: {}]   ;;  %s573_s3 = inlined_call_operand.hbm [shape: bf16[32,64], index: 3, kind: input, shape index: {}]   ;;  %s574_s4 = inlined_call_operand.vmem [shape: bf16[64,128], index: 4, kind: input, shape index: {}]   ;;  %s575_s5 = inlined_call_operand.vmem [shape: f32[16,128], index: 5, kind: output, shape index: {}]  }
   0x1   :  { %11 = vsyncpa [#allocation5], 0  ;;  %s457_s18 = smov [#allocation2]   ;;  %s409_s22 = scalar_lea.hbm %s571_s1, 256 }
   0x2   :  { %s19_s19 = sshll.u32 %s457_s18, 4  ;;  %p410_p0 = scmp.ne.s32.totalorder %s571_s1, %s409_s22  ;;  %s20_s19 = int_to_ptr.vmem [resolvable:$true] %s19_s19 }
   0x3   :  { %p413_p1 = scmp.lt.u32.totalorder %s409_s22, %s571_s1 }
   0x5   :  { %p415_p2 = pnand %p413_p1, %p410_p0 }
   0x7   :  { %418 = shalt.err (!%p415_p2)
}
   0x8   :  { %s419_s27 = scalar_lea.vmem %s20_s19, 256  ;;  %p424_p4 = scmp.lt.s32.totalorder %s20_s19, %s20_s19 }
   0x9   :  { %p420_p3 = scmp.ne.s32.totalorder %s20_s19, %s419_s27  ;;  %p425_p5 = scmp.lt.s32.totalorder %s419_s27, %s419_s27 }
   0xb   :  { %p426_p6 = por %p425_p5, %p424_p4 }
   0xd   :  { %p427_p7 = pnand %p426_p6, %p420_p3 }
   0xf   :  { %430 = shalt.err (!%p427_p7)
}
  0x10   :  { %s458_s28 = smov 64   ;;  %s459_s29 = smov 4  }
  0x11   :  { %25 = dma.hbm_to_vmem [thread:$0]  %s571_s1, 256, %s20_s19, [#allocation3], %s458_s28, %s458_s28, %s459_s29  }
  0x12   :  { %s460_s7 = smov [#allocation4]   ;;  %s431_s11 = scalar_lea.hbm %s573_s3, 256 }
  0x13   :  { %s33_s8 = sshll.u32 %s460_s7, 4  ;;  %p432_p8 = scmp.ne.s32.totalorder %s573_s3, %s431_s11  ;;  %s34_s8 = int_to_ptr.vmem [resolvable:$true] %s33_s8 }
  0x14   :  { %p435_p9 = scmp.lt.u32.totalorder %s431_s11, %s573_s3 }
  0x16   :  { %p437_p10 = pnand %p435_p9, %p432_p8 }
  0x18   :  { %440 = shalt.err (!%p437_p10)
}
  0x19   :  { %s441_s16 = scalar_lea.vmem %s34_s8, 256  ;;  %p446_p12 = scmp.lt.s32.totalorder %s34_s8, %s34_s8 }
  0x1a   :  { %p442_p11 = scmp.ne.s32.totalorder %s34_s8, %s441_s16  ;;  %p447_p13 = scmp.lt.s32.totalorder %s441_s16, %s441_s16 }
  0x1c   :  { %p448_p0 = por %p447_p13, %p446_p12 }
  0x1e   :  { %p449_p1 = pnand %p448_p0, %p442_p11 }
  0x20   :  { %452 = shalt.err (!%p449_p1)
}
  0x21   :  { %39 = dma.hbm_to_vmem [thread:$0]  %s573_s3, 256, %s34_s8, [#allocation5], %s458_s28, %s458_s28, %s459_s29  }
  0x22   :  { %453 = dma.done.wait [#allocation3], 256  }
  0x23   :  { %454 = vsyncadd [#allocation3], 4294967040 }
  0x24   :  { %455 = dma.done.wait [#allocation5], 256  }
  0x25   :  { %456 = vsyncadd [#allocation5], 4294967040  ;;  %v461_v0 = vmov 0.0   ;;  %vm462_vm0 = vmmov 0   ;;  %v392_v1 = vld [vmem:[#allocation2] sm:$0xff]   ;;  %v393_v2 = vld [vmem:[#allocation2 + $0x8] sm:$0xff]  }
  0x26   :  { %358 = vmatprep.subr.bf16.mxu1 %v461_v0  ;;  %362 = vmatprep.mubr.msk.bf16.mxu1 %vm462_vm0, %v461_v0  ;;  %v394_v3 = vld [vmem:[%s570_s0] sm:$0xff]   ;;  %vm81_vm1 = vcmask 261120   ;;  %v395_v17 = vld [vmem:[#allocation4] sm:$0xff]   ;;  %v396_v18 = vld [vmem:[#allocation4 + $0x8] sm:$0xff]   ;;  %vm277_vm2 = vcmask 523264  }
  0x27   :  { %374 = vmatprep.subr.bf16.mxu0 %v461_v0  ;;  %382 = vmatprep.mubr.msk.bf16.mxu0 %vm462_vm0, %v461_v0  ;;  %v330_v4 = vld [vmem:[%s572_s2] ss:$0 sm:$0xff]  ;;  %v398_v20 = vld [vmem:[%s574_s4 + $0x8] sm:$0xff]   ;;  %v335_v39 = vld [vmem:[%s572_s2 + $0x1] ss:$0 sm:$0xff] }
  0x28   :  { %359 = vmatpush3.bf16.msra.mxu1 %v392_v1  ;;  %v397_v19 = vld [vmem:[%s574_s4] sm:$0xff]   ;;  %v399_v52 = vld [vmem:[%s574_s4 + $0x10] sm:$0xff]   ;;  %v400_v53 = vld [vmem:[%s574_s4 + $0x18] sm:$0xff]  }
  0x29   :  { %360 = vmatprep.subr.bf16.mxu1 %v461_v0  ;;  %375 = vmatpush3.bf16.msra.mxu0 %v397_v19  ;;  %v336_v41 = vld [vmem:[%s572_s2 + $0x2] ss:$0 sm:$0xff]  ;;  %v337_v54 = vld [vmem:[%s572_s2 + $0x3] ss:$0 sm:$0xff] }
  0x2a   :  { %376 = vmatprep.subr.bf16.mxu0 %v461_v0 }
  0x2c   :  { %361 = vmatpush3.bf16.msra.mxu1 %v393_v2 }
  0x2d   :  { %366 = vmatprep.subr.bf16.mxu1 %v461_v0  ;;  %377 = vmatpush3.bf16.msra.mxu0 %v398_v20 }
  0x2e   :  { %378 = vmatprep.subr.bf16.mxu0 %v461_v0 }
  0x2f   :  { %363 = vmatmul.mubr.msk.bf16.vlgmr.msra.gmra.mrb[0].mxu1 %vm81_vm1, %v394_v3 }
  0x30   :  { %370 = vmatprep.mubr.msk.bf16.mxu1 %vm462_vm0, %v461_v0  ;;  %367 = vmatpush3.bf16.msra.mxu1 %v395_v17 }
  0x31   :  { %368 = vmatprep.subr.bf16.mxu1 %v461_v0  ;;  %379 = vmatpush3.bf16.msra.mxu0 %v399_v52 }
  0x32   :  { %380 = vmatprep.subr.bf16.mxu0 %v461_v0  ;;  %v341_v0 = vld [vmem:[%s572_s2 + $0x4] ss:$0 sm:$0xff] }
  0x34   :  { %369 = vmatpush3.bf16.msra.mxu1 %v396_v18 }
  0x35   :  { %381 = vmatpush3.bf16.msra.mxu0 %v400_v53 }
 0x102   :  { %v119_v5 = vpop.f32.mrb[0].mxu1 }
 0x103   :  { %v120_v6 = vadd.f32 %v330_v4, %v119_v5  ;;  %v364_v7 = vpop.f32.mrb[1].mxu1 }
 0x104   :  { %v122_v8 = vpop.f32.mrb[2].mxu1 }
 0x105   :  { %v123_v9 = vadd.f32 %v330_v4, %v122_v8  ;;  %v365_v10 = vpop.f32.mrb[3].mxu1  ;;  %v126_v11 = vsel %vm81_vm1, %v120_v6, 0.0  ;;  %v135_v12 = vmul.f32 %v120_v6, %v120_v6 }
 0x106   :  { %127 = vadd.xlane.f32.xlu0 %v126_v11 }
 0x107   :  { %v137_v13 = vsel %vm81_vm1, %v135_v12, 0.0  ;;  %v136_v14 = vmul.f32 %v123_v9, %v123_v9  ;;  %v129_v15 = vsel %vm81_vm1, %v123_v9, 0.0 }
 0x108   :  { %138 = vadd.xlane.f32.xlu1 %v137_v13 }
 0x109   :  { %v140_v16 = vsel %vm81_vm1, %v136_v14, 0.0 }
 0x10a   :  { %130 = vadd.xlane.f32.xlu0 %v129_v15 }
 0x10c   :  { %141 = vadd.xlane.f32.xlu1 %v140_v16 }
 0x193   :  { %v128_v21 = vpop.xlane.xlu0 %127 }
 0x194   :  { %v133_v22 = vmul.f32 0.03125, %v128_v21 }
 0x195   :  { %v139_v23 = vpop.xlane.xlu1 %138 }
 0x196   :  { %v145_v24 = vmul.f32 %v133_v22, %v133_v22  ;;  %v143_v25 = vmul.f32 0.03125, %v139_v23  ;;  %v151_v37 = vsub.f32 %v120_v6, %v133_v22 }
 0x197   :  { %v131_v26 = vpop.xlane.xlu0 %130 }
 0x198   :  { %v147_v27 = vsub.f32 %v143_v25, %v145_v24  ;;  %v134_v28 = vmul.f32 0.03125, %v131_v26 }
 0x199   :  { %v142_v29 = vpop.xlane.xlu1 %141 }
 0x19a   :  { %v149_v30 = vmax.f32 %v147_v27, 0.0  ;;  %v146_v31 = vmul.f32 %v134_v28, %v134_v28  ;;  %v144_v32 = vmul.f32 0.03125, %v142_v29  ;;  %v152_v43 = vsub.f32 %v123_v9, %v134_v28 }
 0x19c   :  { %v153_v33 = vadd.f32 1e-05, %v149_v30  ;;  %v148_v34 = vsub.f32 %v144_v32, %v146_v31 }
 0x19e   :  { %401 = vrsqrt.f32 %v153_v33  ;;  %v150_v35 = vmax.f32 %v148_v34, 0.0 }
 0x1a0   :  { %v154_v36 = vadd.f32 1e-05, %v150_v35 }
 0x1a2   :  { %403 = vrsqrt.f32 %v154_v36 }
 0x1a8   :  { %v402_v38 = vpop.eup %401 }
 0x1a9   :  { %v157_v40 = vmul.f32 %v402_v38, %v151_v37 }
 0x1ab   :  { %v163_v42 = vmul.f32 %v335_v39, %v157_v40 }
 0x1ac   :  { %v404_v44 = vpop.eup %403 }
 0x1ad   :  { %v158_v45 = vmul.f32 %v404_v44, %v152_v43  ;;  %v169_v46 = vadd.f32 %v336_v41, %v163_v42 }
 0x1af   :  { %v164_v47 = vmul.f32 %v335_v39, %v158_v45  ;;  %405 = vtanh.f32 %v169_v46 }
 0x1b1   :  { %v170_v48 = vadd.f32 %v336_v41, %v164_v47 }
 0x1b3   :  { %407 = vtanh.f32 %v170_v48 }
 0x1b9   :  { %v406_v49 = vpop.eup %405 }
 0x1bd   :  { %v408_v50 = vpop.eup %407 }
 0x1be   :  { %v173_v51 = vpack.c.bf16 %v408_v50, %v406_v49 }
 0x1c0   :  { %371 = vmatmul.mubr.msk.bf16.vlgmr.msra.gmra.mrb[4].mxu1 %vm81_vm1, %v173_v51 }
 0x293   :  { %v231_v55 = vpop.f32.mrb[4].mxu1 }
 0x294   :  { %v232_v56 = vadd.f32 %v337_v54, %v231_v55  ;;  %v372_v57 = vpop.f32.mrb[5].mxu1 }
 0x295   :  { %v234_v58 = vpop.f32.mrb[6].mxu1 }
 0x296   :  { %v235_v59 = vadd.f32 %v337_v54, %v234_v58  ;;  %v373_v60 = vpop.f32.mrb[7].mxu1  ;;  %v238_v61 = vmax.f32 %v232_v56, 0.0 }
 0x298   :  { %v239_v62 = vmax.f32 %v235_v59, 0.0 }
 0x29a   :  { %v240_v63 = vpack.c.bf16 %v239_v62, %v238_v61 }
 0x29c   :  { %383 = vmatmul.mubr.msk.bf16.vlgmr.msra.gmra.mrb[0].mxu0 %vm277_vm2, %v240_v63 }
 0x36f   :  { %v315_v1 = vpop.f32.mrb[0].mxu0 }
 0x370   :  { %v316_v2 = vadd.f32 %v341_v0, %v315_v1  ;;  %v384_v3 = vpop.f32.mrb[1].mxu0 }
 0x371   :  { %v318_v4 = vpop.f32.mrb[2].mxu0 }
 0x372   :  { %322 = vst [vmem:[%s575_s5] sm:$0xff] %v316_v2  ;;  %v319_v5 = vadd.f32 %v341_v0, %v318_v4  ;;  %v385_v6 = vpop.f32.mrb[3].mxu0 }
 0x374   :  { %323 = vst [vmem:[%s575_s5 + $0x8] sm:$0xff] %v319_v5 }
 0x375   :  { %328 = vsyncpa [#allocation3], 1 }
 0x376   :  { %329 = vsyncpa [#allocation5], 1 }

</bundles_post_ra>
